<compile_context>
chip_gen: v7x
topology: tpu7x:2x2x1
jax: 0.10.0
libtpu: 0.0.40
codegen_flags: <defaults>
</compile_context>

<pallas_src>
import functools
import math

import numpy as np
import jax
import jax.numpy as jnp
from jax.experimental import pallas as pl
from jax.experimental.pallas import tpu as pltpu


# ------------------------------------------------------------------
# Host-side operator construction (float64, mirrors the PyTorch module)
# ------------------------------------------------------------------
def _gaussian_1d(sigma: float, width: int) -> np.ndarray:
    """1-D profile; the reference 2-D GaussianKernel == outer(g, g)."""
    assert not ((width is None or width == 0) and (sigma is None or sigma == 0))
    if width is None or width == 0:
        width = int(2.0 * 3.0 * sigma + 1.0)
    if width % 2 == 0:
        width += 1
    if sigma is None or sigma == 0:
        sigma = (width - 1) / 6.0
    half = width // 2
    t = np.linspace(-half, half, width).astype(np.float64)
    g = np.exp(-(t ** 2) / (2.0 * sigma ** 2))
    return g / g.sum()


def _band_matrix(n: int, taps: np.ndarray) -> np.ndarray:
    """(n, n) operator of 1-D cross-correlation with zero padding = width//2."""
    width = taps.shape[0]
    pad = width // 2
    G = np.zeros((n, n), np.float64)
    for u in range(width):
        for i in range(n):
            j = i + u - pad
            if 0 <= j < n:
                G[i, j] += taps[u]
    return G


def _interp_matrix(out_n: int, in_n: int) -> np.ndarray:
    """(out_n, in_n) bilinear interpolation matrix, align_corners=True."""
    M = np.zeros((out_n, in_n), np.float64)
    if out_n == 1 or in_n == 1:
        M[:, 0] = 1.0
        return M
    coords = np.arange(out_n, dtype=np.float64) * (in_n - 1) / (out_n - 1)
    lo = np.clip(np.floor(coords).astype(np.int64), 0, in_n - 2)
    frac = coords - lo
    M[np.arange(out_n), lo] += 1.0 - frac
    M[np.arange(out_n), lo + 1] += frac
    return M


WIDTH1, WIDTH2 = 5, 9                 # DoG(sigma1=0, sigma2=0, width1=5, width2=9)
_G1 = _gaussian_1d(0.0, WIDTH1)       # sigma = 4/6
_G2 = _gaussian_1d(0.0, WIDTH2)       # sigma = 8/6


@functools.lru_cache(maxsize=None)
def _axis_operators(H: int, W: int, scales: tuple):
    """List of (sign, Ch (H,H), Cw (W,W)) composed per-scale axis operators."""
    terms = []
    for s in scales:
        s = float(s)
        if s == 1.0:
            Hr, Wr = H, W
            Dh, Dw, Uh, Uw = np.eye(H), np.eye(W), np.eye(H), np.eye(W)
        else:
            Hr, Wr = int(math.floor(H * s)), int(math.floor(W * s))   # F.interpolate sizing
            Dh, Dw = _interp_matrix(Hr, H), _interp_matrix(Wr, W)     # resize to scale s
            Uh, Uw = _interp_matrix(H, Hr), _interp_matrix(W, Wr)     # resize back to (H, W)
        for sign, g in ((1.0, _G1), (-1.0, _G2)):                     # DoG = blur1 - blur2
            Ch = Uh @ _band_matrix(Hr, g) @ Dh
            Cw = Uw @ _band_matrix(Wr, g) @ Dw
            terms.append((sign, Ch, Cw))
    return terms


@functools.lru_cache(maxsize=None)
def _fused_operator(H: int, W: int, scales: tuple) -> np.ndarray:
    """(H*W, H*W) fused DoGBlob operator (row-major flattening), float64."""
    M = np.zeros((H * W, H * W), np.float64)
    for sign, Ch, Cw in _axis_operators(H, W, scales):
        M += sign * np.kron(Ch, Cw)          # M[p*W+q, h*W+w] = Ch[p,h] * Cw[q,w]
    return M


@functools.lru_cache(maxsize=None)
def _fused_operator_T(H: int, W: int, HWp: int, scales: tuple) -> np.ndarray:
    """(HWp, HWp) float32 transposed operator, zero-padded to lane-dense size."""
    HW = H * W
    MT = np.zeros((HWp, HWp), np.float32)
    MT[:HW, :HW] = _fused_operator(H, W, scales).T.astype(np.float32)
    return MT


# ------------------------------------------------------------------
# Pallas kernel: one MXU matmul per block of flattened images
# ------------------------------------------------------------------
def _dogblob_kernel(x_ref, mt_ref, o_ref):
    # x_ref : (TN, HWp)  bf16 block of flattened images (lane-dense last dim)
    # mt_ref: (HWp, HWp) bf16 fused operator transpose (fetched once, grid-invariant)
    # o_ref : (TN, HWp)  f32
    o_ref[...] = jnp.dot(x_ref[...], mt_ref[...],
                         preferred_element_type=jnp.float32)


def _round_up(x: int, m: int) -> int:
    return (x + m - 1) // m * m


def _choose_tn(N: int, HWp: int) -> int:
    """Rows of flattened images per grid step."""
    # ~4 MiB of bf16 input rows per block (=> ~8 MiB f32 output rows); double
    # buffered that is ~24 MiB steady-state VMEM, which fits every generation
    # once vmem_limit_bytes is raised explicitly.
    tn_cap = max(16, ((4 << 20) // (2 * HWp)) // 16 * 16)
    # Aim for >= 8 grid steps so the 'parallel' axis has work for both v7x
    # TensorCores and per-step pipeline overhead stays amortized; v5e/v6e only
    # pay a few extra (cheap) grid steps.
    tn_split = max(16, _round_up(-(-N // 8), 16))
    # Never exceed the (8-aligned) row count: for tiny batches the single block
    # exactly covers the array, avoiding any masked rows.
    return max(8, min(tn_cap, tn_split, _round_up(N, 8)))


@functools.partial(jax.jit, static_argnames=("scales",))
def dog_blob(x: jax.Array, scales=(0.75, 1.0, 1.25)) -> jax.Array:
    """DoGBlob forward for an NCHW tensor (default DoG params: widths 5 and 9)."""
    B, C, H, W = x.shape
    HW = H * W
    if HW > 1024:
        # TODO(synk): large feature maps need a row-tiled separable-conv kernel;
        # the fused (H*W)^2-operator path targets the small-map regime.
        raise NotImplementedError("dog_blob fused-operator path requires H*W <= 1024")
    HWp = _round_up(HW, 128)            # lane-dense last dim (no-op for 16x16)

    scales = tuple(float(s) for s in scales)
    # Host-built constant, cached; folded into the jitted executable.
    MT = jnp.asarray(_fused_operator_T(H, W, HWp, scales), dtype=jnp.bfloat16)

    N = B * C
    x_flat = x.reshape(N, HW).astype(jnp.bfloat16)   # bf16: MXU-native, half HBM bytes
    if HWp != HW:
        x_flat = jnp.pad(x_flat, ((0, 0), (0, HWp - HW)))   # only for non-128-aligned maps

    TN = _choose_tn(N, HWp)
    grid = (pl.cdiv(N, TN),)            # ragged last block is masked by Pallas

    # Steady-state VMEM: double-buffered x + out blocks, plus (worst case) two
    # copies of the operator, plus margin for compiler scratch.
    vmem_limit = max(32 << 20,
                     2 * TN * HWp * (2 + 4) + 2 * HWp * HWp * 2 + (4 << 20))

    out = pl.pallas_call(
        _dogblob_kernel,
        out_shape=jax.ShapeDtypeStruct((N, HWp), jnp.float32),
        grid=grid,
        in_specs=[
            pl.BlockSpec((TN, HWp), lambda n: (n, 0)),    # image block (bf16)
            pl.BlockSpec((HWp, HWp), lambda n: (0, 0)),   # fused operator, DMA'd once
        ],
        out_specs=pl.BlockSpec((TN, HWp), lambda n: (n, 0)),
        compiler_params=pltpu.CompilerParams(
            dimension_semantics=("parallel",),            # shards across v7x's two TCs
            vmem_limit_bytes=int(vmem_limit)),
    )(x_flat, MT)

    if HWp != HW:
        out = out[:, :HW]
    # f32 output matches the reference (torch.zeros() + x promotes to float32).
    return out.reshape(B, C, H, W)


# ------------------------------------------------------------------
if __name__ == "__main__":
    key = jax.random.PRNGKey(0)
    x = jax.random.normal(key, (2, 4, 16, 16), dtype=jnp.float32)   # NCHW

    y = jax.block_until_ready(dog_blob(x))
    assert y.shape == x.shape and y.dtype == jnp.float32
    assert bool(jnp.all(jnp.isfinite(y)))

    B, C, H, W = x.shape
    HW = H * W
    scales = (0.75, 1.0, 1.25)
    y64 = np.asarray(y, dtype=np.float64)

    # (a) Tight check of the kernel machinery: same bf16-quantized operands,
    #     accumulated in float64 on the host (only MXU f32-accumulation error
    #     remains).
    x_q = np.asarray(jnp.asarray(x, dtype=jnp.bfloat16).astype(jnp.float32),
                     dtype=np.float64).reshape(B * C, HW)
    mt_q = np.asarray(
        jnp.asarray(_fused_operator_T(H, W, HW, scales),
                    dtype=jnp.bfloat16).astype(jnp.float32),
        dtype=np.float64)
    ref_tight = (x_q @ mt_q).reshape(B, C, H, W)
    err_tight = float(np.max(np.abs(y64 - ref_tight)))
    assert err_tight < 2e-3, f"kernel vs bf16-quantized host matmul: {err_tight}"

    # (b) End-to-end sanity vs the float64 per-scale reference (the tolerance
    #     is the bf16 quantization budget of the input and of the operator).
    #     TODO(synk): add a one-off cross-check against the torch DoGBlob
    #     module in an environment where torch is available.
    x64 = np.asarray(x, dtype=np.float64)
    ref = np.zeros_like(x64)
    for sign, Ch, Cw in _axis_operators(H, W, scales):
        ref += sign * np.einsum("ph,bchw,qw->bcpq", Ch, x64, Cw)
    err = float(np.max(np.abs(y64 - ref)))
    assert err < 1e-1, f"max abs error vs f64 reference: {err}"

    print("KERNEL_OK")
</pallas_src>

<mosaic_0001>
module attributes {stable_mosaic.version = 11 : i64} {
  func.func @_dogblob_kernel(%arg0: i32, %arg1: memref<8x256xbf16, #tpu.memory_space<vmem>>, %arg2: memref<256x256xbf16, #tpu.memory_space<vmem>>, %arg3: memref<8x256xf32, #tpu.memory_space<vmem>>) attributes {dimension_semantics = [#tpu.dimension_semantics<parallel>], iteration_bounds = array<i64: 1>, scalar_prefetch = 0 : i64, scratch_operands = 0 : i64, tpu.core_type = #tpu.core_type<tc>, window_params = [{transform_indices = @transform_0, window_bounds = array<i64: 8, 256>}, {pipeline_mode = #tpu.pipeline_mode<synchronous>, transform_indices = @transform_1, window_bounds = array<i64: 256, 256>}, {transform_indices = @transform_2, window_bounds = array<i64: 8, 256>}]} {
    %c0 = arith.constant 0 : index
    %c0_0 = arith.constant 0 : index
    %0 = vector.load %arg1[%c0, %c0_0] : memref<8x256xbf16, #tpu.memory_space<vmem>>, vector<8x256xbf16>
    %c0_1 = arith.constant 0 : index
    %c0_2 = arith.constant 0 : index
    %1 = vector.load %arg2[%c0_1, %c0_2] : memref<256x256xbf16, #tpu.memory_space<vmem>>, vector<256x256xbf16>
    %cst = arith.constant dense<0.000000e+00> : vector<8x256xf32>
    %2 = tpu.matmul %0, %1, %cst {dimension_numbers = #tpu.dot_dimension_numbers<[1], [0], [0], [1], [0, 0, 1, 1], [], []>} : vector<8x256xbf16>, vector<256x256xbf16>, vector<8x256xf32> -> vector<8x256xf32>
    %c0_3 = arith.constant 0 : index
    %c0_4 = arith.constant 0 : index
    %3 = vector.load %arg3[%c0_3, %c0_4] : memref<8x256xf32, #tpu.memory_space<vmem>>, vector<8x256xf32>
    tpu.vector_store %arg3[%c0_3, %c0_4], %2 {strides = array<i32>} : memref<8x256xf32, #tpu.memory_space<vmem>>, vector<8x256xf32>,
    return
  }
  func.func @transform_0(%arg0: i32) -> (i32, i32) {
    %c0_i32 = arith.constant 0 : i32
    %c0_i32_0 = arith.constant 0 : i32
    return %arg0, %c0_i32 : i32, i32
  }
  func.func @transform_1(%arg0: i32) -> (i32, i32) {
    %c0_i32 = arith.constant 0 : i32
    %c0_i32_0 = arith.constant 0 : i32
    %c0_i32_1 = arith.constant 0 : i32
    return %c0_i32, %c0_i32_0 : i32, i32
  }
  func.func @transform_2(%arg0: i32) -> (i32, i32) {
    %c0_i32 = arith.constant 0 : i32
    %c0_i32_0 = arith.constant 0 : i32
    return %arg0, %c0_i32 : i32, i32
  }
}

</mosaic_0001>

<bundles_post_ra>
// kernel: dog_blob.1
= control target key start
LH: loop header
LB: loop body
LE: loop exit
PB: predicated region body
PF: predicated region fallthrough
CT: control target
= control target key end

     0   :  { %s462_s1 = inlined_call_operand.vmem [shape: bf16[256,256], index: 1, kind: input, shape index: {}]   ;;  %s463_s0 = inlined_call_operand.vmem [shape: bf16[8,256], index: 0, kind: input, shape index: {}]   ;;  %s464_s2 = inlined_call_operand.vmem [shape: f32[8,256], index: 2, kind: output, shape index: {}]  }
   0x1   :  { %v292_v0 = vld [vmem:[%s462_s1 + $0x4] ss:$8 sps:$4 sm:$0xff]   ;;  %v294_v1 = vld [vmem:[%s462_s1] ss:$8 sps:$4 sm:$0xff]   ;;  %v295_v2 = vld [vmem:[%s462_s1 + $0x14] ss:$8 sps:$4 sm:$0xff]  }
   0x2   :  { %211 = vmatprep.subr.bf16.mxu0 %v292_v0  ;;  %v297_v3 = vld [vmem:[%s462_s1 + $0x10] ss:$8 sps:$4 sm:$0xff]   ;;  %v298_v4 = vld [vmem:[%s462_s1 + $0x24] ss:$8 sps:$4 sm:$0xff]   ;;  %v300_v5 = vld [vmem:[%s462_s1 + $0x20] ss:$8 sps:$4 sm:$0xff]  }
   0x3   :  { %212 = vmatpush1.bf16.msra.mxu0 %v294_v1  ;;  %v301_v6 = vld [vmem:[%s462_s1 + $0x34] ss:$8 sps:$4 sm:$0xff]   ;;  %v303_v7 = vld [vmem:[%s462_s1 + $0x30] ss:$8 sps:$4 sm:$0xff]   ;;  %v304_v8 = vld [vmem:[%s462_s1 + $0x44] ss:$8 sps:$4 sm:$0xff]  }
   0x4   :  { %213 = vmatprep.subr.bf16.mxu0 %v295_v2  ;;  %v306_v9 = vld [vmem:[%s462_s1 + $0x40] ss:$8 sps:$4 sm:$0xff]   ;;  %v307_v10 = vld [vmem:[%s462_s1 + $0x54] ss:$8 sps:$4 sm:$0xff]   ;;  %v309_v11 = vld [vmem:[%s462_s1 + $0x50] ss:$8 sps:$4 sm:$0xff]  }
   0x5   :  { %v310_v12 = vld [vmem:[%s462_s1 + $0x64] ss:$8 sps:$4 sm:$0xff]   ;;  %v312_v15 = vld [vmem:[%s462_s1 + $0x60] ss:$8 sps:$4 sm:$0xff]   ;;  %v313_v16 = vld [vmem:[%s462_s1 + $0x74] ss:$8 sps:$4 sm:$0xff]  }
   0x6   :  { %v11_v13 = vld [vmem:[%s463_s0] sm:$0xff]  ;;  %v315_v17 = vld [vmem:[%s462_s1 + $0x70] ss:$8 sps:$4 sm:$0xff]   ;;  %v319_v20 = vld [vmem:[%s462_s1 + $0x94] ss:$8 sps:$4 sm:$0xff]  }
   0x7   :  { %214 = vmatpush1.bf16.msra.mxu0 %v297_v3  ;;  %v259_v14 = vcombine.high %v11_v13, %v11_v13  ;;  %v316_v18 = vld [vmem:[%s462_s1 + $0x84] ss:$8 sps:$4 sm:$0xff]   ;;  %v318_v19 = vld [vmem:[%s462_s1 + $0x80] ss:$8 sps:$4 sm:$0xff]   ;;  %v321_v21 = vld [vmem:[%s462_s1 + $0x90] ss:$8 sps:$4 sm:$0xff]   ;;  %v258_v34 = vcombine.low %v11_v13, %v11_v13 }
   0x8   :  { %215 = vmatprep.subr.bf16.mxu0 %v298_v4  ;;  %v322_v22 = vld [vmem:[%s462_s1 + $0xa4] ss:$8 sps:$4 sm:$0xff]   ;;  %v324_v23 = vld [vmem:[%s462_s1 + $0xa0] ss:$8 sps:$4 sm:$0xff]   ;;  %v325_v24 = vld [vmem:[%s462_s1 + $0xb4] ss:$8 sps:$4 sm:$0xff]  }
   0x9   :  { %243 = vmatprep.mubr.bf16.mxu0 %v259_v14  ;;  %v327_v25 = vld [vmem:[%s462_s1 + $0xb0] ss:$8 sps:$4 sm:$0xff]   ;;  %v328_v26 = vld [vmem:[%s462_s1 + $0xc4] ss:$8 sps:$4 sm:$0xff]   ;;  %v330_v27 = vld [vmem:[%s462_s1 + $0xc0] ss:$8 sps:$4 sm:$0xff]  }
   0xa   :  { %v331_v28 = vld [vmem:[%s462_s1 + $0xd4] ss:$8 sps:$4 sm:$0xff]   ;;  %v333_v29 = vld [vmem:[%s462_s1 + $0xd0] ss:$8 sps:$4 sm:$0xff]   ;;  %v334_v30 = vld [vmem:[%s462_s1 + $0xe4] ss:$8 sps:$4 sm:$0xff]  }
   0xb   :  { %216 = vmatpush1.bf16.msra.mxu0 %v300_v5  ;;  %v336_v31 = vld [vmem:[%s462_s1 + $0xe0] ss:$8 sps:$4 sm:$0xff]   ;;  %v337_v32 = vld [vmem:[%s462_s1 + $0xf4] ss:$8 sps:$4 sm:$0xff]   ;;  %v339_v33 = vld [vmem:[%s462_s1 + $0xf0] ss:$8 sps:$4 sm:$0xff]  }
   0xc   :  { %217 = vmatprep.subr.bf16.mxu0 %v301_v6 }
   0xf   :  { %218 = vmatpush1.bf16.msra.mxu0 %v303_v7 }
  0x10   :  { %219 = vmatprep.subr.bf16.mxu0 %v304_v8 }
  0x13   :  { %220 = vmatpush1.bf16.msra.mxu0 %v306_v9 }
  0x14   :  { %221 = vmatprep.subr.bf16.mxu0 %v307_v10 }
  0x17   :  { %222 = vmatpush1.bf16.msra.mxu0 %v309_v11 }
  0x18   :  { %223 = vmatprep.subr.bf16.mxu0 %v310_v12 }
  0x1b   :  { %224 = vmatpush1.bf16.msra.mxu0 %v312_v15 }
  0x1c   :  { %225 = vmatprep.subr.bf16.mxu0 %v313_v16 }
  0x1f   :  { %226 = vmatpush1.bf16.msra.mxu0 %v315_v17 }
  0x20   :  { %227 = vmatprep.subr.bf16.mxu0 %v316_v18 }
  0x23   :  { %228 = vmatpush1.bf16.msra.mxu0 %v318_v19 }
  0x24   :  { %229 = vmatprep.subr.bf16.mxu0 %v319_v20 }
  0x27   :  { %230 = vmatpush1.bf16.msra.mxu0 %v321_v21 }
  0x28   :  { %231 = vmatprep.subr.bf16.mxu0 %v322_v22 }
  0x2b   :  { %232 = vmatpush1.bf16.msra.mxu0 %v324_v23 }
  0x2c   :  { %233 = vmatprep.subr.bf16.mxu0 %v325_v24 }
  0x2f   :  { %234 = vmatpush1.bf16.msra.mxu0 %v327_v25 }
  0x30   :  { %235 = vmatprep.subr.bf16.mxu0 %v328_v26 }
  0x33   :  { %236 = vmatpush1.bf16.msra.mxu0 %v330_v27 }
  0x34   :  { %237 = vmatprep.subr.bf16.mxu0 %v331_v28 }
  0x37   :  { %238 = vmatpush1.bf16.msra.mxu0 %v333_v29 }
  0x38   :  { %239 = vmatprep.subr.bf16.mxu0 %v334_v30 }
  0x3b   :  { %240 = vmatpush1.bf16.msra.mxu0 %v336_v31 }
  0x3c   :  { %241 = vmatprep.subr.bf16.mxu0 %v337_v32 }
  0x3f   :  { %242 = vmatpush1.bf16.msra.mxu0 %v339_v33 }
  0x42   :  { %244 = vmatmul.mubr.bf16.vlgmr.msra.gmra.mrb[0].mxu0 %v258_v34 }
 0x115   :  { %v245_v35 = vpop.f32.mrb[0].mxu0 }
 0x116   :  { %252 = vst [vmem:[%s464_s2] sm:$0xff] %v245_v35  ;;  %v247_v36 = vpop.f32.mrb[1].mxu0 }
 0x117   :  { %253 = vst [vmem:[%s464_s2 + $0x8] sm:$0xff] %v247_v36  ;;  %v249_v37 = vpop.f32.mrb[2].mxu0 }
 0x118   :  { %v250_v38 = vpop.f32.mrb[3].mxu0 }

</bundles_post_ra>
